<compile_context>
chip_gen: v6e
topology: v6e:2x2x1
jax: 0.10.0
libtpu: 0.0.40
codegen_flags: <defaults>
</compile_context>

<pallas_src>
import math

import jax
import jax.numpy as jnp
from jax import lax
from jax.experimental import pallas as pl
from jax.experimental.pallas import tpu as pltpu

_INV_SQRT2 = 1.0 / math.sqrt(2.0)
_MiB = 1024 * 1024


def _gelu_erf(h):
    # Exact-erf GELU (matches the PyTorch module), computed in f32.
    return h * 0.5 * (1.0 + lax.erf(h * _INV_SQRT2))


# --------------------------- resident-weight path --------------------------- #
def ffn_kernel_resident(x_ref, w1_ref, b1_ref, w2_ref, b2_ref, o_ref):
    # x_ref: (tm, D); w1_ref: (D, inner); b1_ref: (1, inner);
    # w2_ref: (inner, D); b2_ref: (1, D); o_ref: (tm, D)
    x = x_ref[...]

    # fc1: MXU matmul in the operands' native dtype, f32 accumulation.
    h = jnp.dot(x, w1_ref[...], preferred_element_type=jnp.float32)
    h = h + b1_ref[...].astype(jnp.float32)
    h = _gelu_erf(h)
    # dropout -> identity (eval mode).
    # TODO(synk): training-mode dropout (pltpu.prng_*) not implemented.

    # fc2: cast the activation back to the weight dtype so the second matmul
    # also runs on the native-precision MXU path; accumulate in f32.
    h = h.astype(w2_ref.dtype)
    out = jnp.dot(h, w2_ref[...], preferred_element_type=jnp.float32)
    out = out + b2_ref[...].astype(jnp.float32) + x.astype(jnp.float32)

    # dropout -> identity (eval mode).
    o_ref[...] = out.astype(o_ref.dtype)


# ------------------------------ K-tiled path ------------------------------- #
def ffn_kernel_ktiled(x_ref, w1_ref, b1_ref, w2_ref, b2_ref, o_ref, acc_ref):
    # Grid: (row tile i, inner tile k); k is the reduction axis (last, arbitrary).
    # x_ref: (tm, D); w1_ref: (D, tk); b1_ref: (1, tk); w2_ref: (tk, D);
    # b2_ref: (1, D); o_ref: (tm, D); acc_ref: (tm, D) f32 scratch.
    k = pl.program_id(1)

    @pl.when(k == 0)
    def _():
        acc_ref[...] = jnp.zeros_like(acc_ref)

    x = x_ref[...]
    # fc1 column slab k, bias + GELU applied per-slab (elementwise, so exact).
    h = jnp.dot(x, w1_ref[...], preferred_element_type=jnp.float32)
    h = h + b1_ref[...].astype(jnp.float32)
    h = _gelu_erf(h)
    # dropout -> identity (eval mode).
    h = h.astype(w2_ref.dtype)
    # fc2 partial sum over the inner dimension.
    acc_ref[...] += jnp.dot(h, w2_ref[...], preferred_element_type=jnp.float32)

    @pl.when(k == pl.num_programs(1) - 1)
    def _():
        out = acc_ref[...] + b2_ref[...].astype(jnp.float32) + x.astype(jnp.float32)
        # dropout -> identity (eval mode).
        o_ref[...] = out.astype(o_ref.dtype)


# --------------------------------- wrapper --------------------------------- #
def _round_up(n, m):
    return ((n + m - 1) // m) * m


def _vmem_capacity_bytes():
    # Per-TensorCore VMEM capacity (128 MiB v5e/v6e, 64 MiB v7x).  With
    # dimension_semantics=("parallel", ...) each TC holds its own copy of the
    # resident operands, so all budgeting below is per-TC.
    try:
        cap = int(pltpu.get_tpu_info().vmem_capacity_bytes)
        if cap > 0:
            return cap
    except Exception:
        pass
    return 128 * _MiB


def _resident_footprint(tm, D, inner, w_bytes, x_isz, o_isz):
    return (w_bytes                      # weights+biases, single-buffered
            + 2 * tm * D * x_isz         # x tile, double-buffered
            + 2 * tm * D * o_isz         # out tile, double-buffered
            + tm * inner * 4             # f32 h slab (largest live intermediate)
            + 2 * tm * D * 4)            # f32 matmul-out + residual temps


def _ktiled_footprint(tm, D, tk, w_isz, b_isz, x_isz, o_isz):
    return (2 * 2 * D * tk * w_isz       # (D,tk) + (tk,D) weight slabs, double-buffered
            + 2 * tk * b_isz + D * b_isz # b1 slab (double-buffered) + b2
            + 2 * tm * D * x_isz         # x tile
            + 2 * tm * D * o_isz         # out tile
            + tm * D * 4                 # f32 accumulator scratch
            + tm * tk * 4                # f32 h slab
            + tm * D * 4)                # f32 finalize temp


def feed_forward(x, w1, b1, w2, b2, *, tm=None, tk=None, matmul_dtype=None,
                 force_path=None):
    """x: [B, S, D]; w1: [D, inner]; b1: [inner]; w2: [inner, D]; b2: [D].

    matmul_dtype: optional lower-precision MXU dtype (e.g. jnp.bfloat16 on v5e
      when the model arrives in f32).  Changes numerics slightly; off by default.
    force_path: None | "resident" | "ktiled" (mostly for testing).
    """
    B, S, D = x.shape
    inner = w1.shape[1]
    M = B * S
    out_dtype = x.dtype

    if matmul_dtype is not None:
        # Opt-in bf16 MXU path (v5e has no native f32 MXU).  Output stays in
        # the original dtype; accumulation stays f32.
        x = x.astype(matmul_dtype)
        w1 = w1.astype(matmul_dtype)
        w2 = w2.astype(matmul_dtype)

    cap = _vmem_capacity_bytes()
    usable = max(32 * _MiB, cap - 16 * _MiB)   # leave compiler-internal headroom

    # Generation-aware default row tile: big tiles amortize the ~0.35 us
    # per-grid-step overhead on 128 MiB parts; keep 256 on 64 MiB (v7x) parts
    # so the f32 h slab does not eat the budget.
    if tm is None:
        tm = 512 if cap > 96 * _MiB else 256
    tm_eff = max(16, min(tm, _round_up(M, 16)))   # 16 covers bf16 sublane packing

    x_isz = x.dtype.itemsize
    o_isz = jnp.dtype(out_dtype).itemsize
    w_isz = w1.dtype.itemsize
    b_isz = b1.dtype.itemsize
    weight_bytes = (w1.size * w1.dtype.itemsize + w2.size * w2.dtype.itemsize
                    + b1.size * b1.dtype.itemsize + b2.size * b2.dtype.itemsize)

    # ----- choose resident vs K-tiled path ----- #
    use_ktiled = force_path == "ktiled"
    if force_path is None:
        while (_resident_footprint(tm_eff, D, inner, weight_bytes, x_isz, o_isz)
               > usable and tm_eff > 64):
            tm_eff //= 2
        if _resident_footprint(tm_eff, D, inner, weight_bytes, x_isz, o_isz) > usable:
            if inner % 128 == 0:
                use_ktiled = True
            # else: fall through to resident and hope the compiler copes.
            # TODO(synk): handle inner not a multiple of 128 at huge sizes
            # (pad the weights once on the host) instead of forcing residency.

    if use_ktiled:
        if tk is None:
            candidates = [c for c in (4096, 2048, 1024, 512, 256, 128)
                          if inner % c == 0]
            tk = candidates[-1] if candidates else 128
            for c in candidates:
                if _ktiled_footprint(tm_eff, D, c, w_isz, b_isz, x_isz, o_isz) <= usable:
                    tk = c
                    break
        assert inner % tk == 0, "tk must divide inner for the K-tiled path"
        footprint = _ktiled_footprint(tm_eff, D, tk, w_isz, b_isz, x_isz, o_isz)
    else:
        footprint = _resident_footprint(tm_eff, D, inner, weight_bytes, x_isz, o_isz)

    vmem_limit = int(min(usable, max(32 * _MiB, footprint + 8 * _MiB)))

    grid_m = pl.cdiv(M, tm_eff)
    x2d = x.reshape(M, D)            # view; no HBM copy, no host-side padding
    b1_2d = b1.reshape(1, inner)
    b2_2d = b2.reshape(1, D)

    # Advisory cost for XLA's scheduler around this custom call.
    m_compute = grid_m * tm_eff
    cost = pl.CostEstimate(
        flops=2 * 2 * m_compute * D * inner,          # two matmuls
        transcendentals=m_compute * inner,            # erf
        bytes_accessed=(2 * M * D * x_isz + weight_bytes))

    if not use_ktiled:
        out2d = pl.pallas_call(
            ffn_kernel_resident,
            out_shape=jax.ShapeDtypeStruct((M, D), out_dtype),
            grid_spec=pltpu.PrefetchScalarGridSpec(
                num_scalar_prefetch=0,
                grid=(grid_m,),
                in_specs=[
                    pl.BlockSpec((tm_eff, D), lambda i: (i, 0)),       # x row tile
                    # Grid-invariant operands: single-buffer (their index_map is
                    # constant, double-buffering only doubles VMEM).
                    pl.BlockSpec((D, inner), lambda i: (0, 0),
                                 pipeline_mode=pl.Buffered(1)),        # w1
                    pl.BlockSpec((1, inner), lambda i: (0, 0),
                                 pipeline_mode=pl.Buffered(1)),        # b1
                    pl.BlockSpec((inner, D), lambda i: (0, 0),
                                 pipeline_mode=pl.Buffered(1)),        # w2
                    pl.BlockSpec((1, D), lambda i: (0, 0),
                                 pipeline_mode=pl.Buffered(1)),        # b2
                ],
                out_specs=pl.BlockSpec((tm_eff, D), lambda i: (i, 0)),
            ),
            compiler_params=pltpu.CompilerParams(
                dimension_semantics=("parallel",),      # row tiles -> megacore
                vmem_limit_bytes=vmem_limit),
            cost_estimate=cost,
        )(x2d, w1, b1_2d, w2, b2_2d)
    else:
        grid_k = inner // tk
        out2d = pl.pallas_call(
            ffn_kernel_ktiled,
            out_shape=jax.ShapeDtypeStruct((M, D), out_dtype),
            grid_spec=pltpu.PrefetchScalarGridSpec(
                num_scalar_prefetch=0,
                grid=(grid_m, grid_k),
                in_specs=[
                    pl.BlockSpec((tm_eff, D), lambda i, k: (i, 0)),    # x row tile
                    pl.BlockSpec((D, tk), lambda i, k: (0, k)),        # w1 slab
                    pl.BlockSpec((1, tk), lambda i, k: (0, k)),        # b1 slab
                    pl.BlockSpec((tk, D), lambda i, k: (k, 0)),        # w2 slab
                    pl.BlockSpec((1, D), lambda i, k: (0, 0),
                                 pipeline_mode=pl.Buffered(1)),        # b2
                ],
                out_specs=pl.BlockSpec((tm_eff, D), lambda i, k: (i, 0)),
                scratch_shapes=[pltpu.VMEM((tm_eff, D), jnp.float32)],
            ),
            compiler_params=pltpu.CompilerParams(
                dimension_semantics=("parallel", "arbitrary"),
                vmem_limit_bytes=vmem_limit),
            cost_estimate=cost,
        )(x2d, w1, b1_2d, w2, b2_2d)

    return out2d.reshape(B, S, D)


def _reference(x, w1, b1, w2, b2):
    h = jnp.dot(x, w1) + b1
    h = h * 0.5 * (1.0 + lax.erf(h / jnp.sqrt(2.0)))
    return jnp.dot(h, w2) + b2 + x


if __name__ == "__main__":
    # Small shapes consistent with the module: batch=2, seq=8, d_model=32, inner=64
    B, S, D, INNER = 2, 8, 32, 64

    key = jax.random.PRNGKey(0)
    kx, kw1, kb1, kw2, kb2 = jax.random.split(key, 5)

    x = jax.random.normal(kx, (B, S, D), dtype=jnp.float32)
    # Deterministic synthetic params (PyTorch-Linear shapes, transposed).
    w1 = jax.random.normal(kw1, (D, INNER), dtype=jnp.float32) * (1.0 / math.sqrt(D))
    b1 = jax.random.normal(kb1, (INNER,), dtype=jnp.float32) * 0.01
    w2 = jax.random.normal(kw2, (INNER, D), dtype=jnp.float32) * (1.0 / math.sqrt(INNER))
    b2 = jax.random.normal(kb2, (D,), dtype=jnp.float32) * 0.01

    out = jax.block_until_ready(feed_forward(x, w1, b1, w2, b2))
    ref = _reference(x, w1, b1, w2, b2)
    assert out.shape == (B, S, D)
    assert jnp.allclose(out, ref, atol=1e-5, rtol=1e-5), "mismatch vs reference"

    # Ragged-M path: B*S not a multiple of the tile/sublane count -> Pallas
    # masks the last partial row tile (no host-side pad/slice).
    x_r = jax.random.normal(kx, (2, 7, D), dtype=jnp.float32)
    out_r = jax.block_until_ready(feed_forward(x_r, w1, b1, w2, b2))
    ref_r = _reference(x_r, w1, b1, w2, b2)
    assert out_r.shape == (2, 7, D)
    assert jnp.allclose(out_r, ref_r, atol=1e-5, rtol=1e-5), "ragged mismatch"

    # Exercise the K-tiled (weight-streaming) path on a small lane-dense shape.
    D2, INNER2 = 128, 256
    kx2, kw12, kb12, kw22, kb22 = jax.random.split(jax.random.PRNGKey(1), 5)
    x2 = jax.random.normal(kx2, (2, 8, D2), dtype=jnp.float32)
    w12 = jax.random.normal(kw12, (D2, INNER2), dtype=jnp.float32) * (1.0 / math.sqrt(D2))
    b12 = jax.random.normal(kb12, (INNER2,), dtype=jnp.float32) * 0.01
    w22 = jax.random.normal(kw22, (INNER2, D2), dtype=jnp.float32) * (1.0 / math.sqrt(INNER2))
    b22 = jax.random.normal(kb22, (D2,), dtype=jnp.float32) * 0.01
    out_k = jax.block_until_ready(
        feed_forward(x2, w12, b12, w22, b22, force_path="ktiled", tk=128))
    ref_k = _reference(x2, w12, b12, w22, b22)
    assert jnp.allclose(out_k, ref_k, atol=1e-4, rtol=1e-4), "ktiled mismatch"

    print("KERNEL_OK")
</pallas_src>

<mosaic_0001>
module attributes {stable_mosaic.version = 11 : i64} {
  func.func @ffn_kernel_resident(%arg0: i32, %arg1: memref<16x32xf32, #tpu.memory_space<vmem>>, %arg2: memref<32x64xf32, #tpu.memory_space<vmem>>, %arg3: memref<1x64xf32, #tpu.memory_space<vmem>>, %arg4: memref<64x32xf32, #tpu.memory_space<vmem>>, %arg5: memref<1x32xf32, #tpu.memory_space<vmem>>, %arg6: memref<16x32xf32, #tpu.memory_space<vmem>>) attributes {dimension_semantics = [#tpu.dimension_semantics<parallel>], iteration_bounds = array<i64: 1>, scalar_prefetch = 0 : i64, scratch_operands = 0 : i64, tpu.core_type = #tpu.core_type<tc>, window_params = [{transform_indices = @transform_0, window_bounds = array<i64: 16, 32>}, {pipeline_mode = #tpu.pipeline_mode<synchronous>, transform_indices = @transform_1, window_bounds = array<i64: 32, 64>}, {pipeline_mode = #tpu.pipeline_mode<synchronous>, transform_indices = @transform_2, window_bounds = array<i64: 1, 64>}, {pipeline_mode = #tpu.pipeline_mode<synchronous>, transform_indices = @transform_3, window_bounds = array<i64: 64, 32>}, {pipeline_mode = #tpu.pipeline_mode<synchronous>, transform_indices = @transform_4, window_bounds = array<i64: 1, 32>}, {transform_indices = @transform_5, window_bounds = array<i64: 16, 32>}]} {
    %c0 = arith.constant 0 : index
    %c0_0 = arith.constant 0 : index
    %0 = vector.load %arg1[%c0, %c0_0] : memref<16x32xf32, #tpu.memory_space<vmem>>, vector<16x32xf32>
    %c0_1 = arith.constant 0 : index
    %c0_2 = arith.constant 0 : index
    %1 = vector.load %arg2[%c0_1, %c0_2] : memref<32x64xf32, #tpu.memory_space<vmem>>, vector<32x64xf32>
    %cst = arith.constant dense<0.000000e+00> : vector<16x64xf32>
    %2 = tpu.matmul %0, %1, %cst {dimension_numbers = #tpu.dot_dimension_numbers<[1], [0], [0], [1], [0, 0, 1, 1], [], []>} : vector<16x32xf32>, vector<32x64xf32>, vector<16x64xf32> -> vector<16x64xf32>
    %c0_3 = arith.constant 0 : index
    %c0_4 = arith.constant 0 : index
    %3 = vector.load %arg3[%c0_3, %c0_4] : memref<1x64xf32, #tpu.memory_space<vmem>>, vector<1x64xf32>
    %4 = vector.broadcast %3 : vector<1x64xf32> to vector<16x64xf32>
    %5 = arith.addf %2, %4 : vector<16x64xf32>
    %cst_5 = arith.constant 5.000000e-01 : f32
    %6 = vector.broadcast %cst_5 : f32 to vector<16x64xf32>
    %7 = arith.mulf %5, %6 : vector<16x64xf32>
    %cst_6 = arith.constant 0.707106769 : f32
    %8 = vector.broadcast %cst_6 : f32 to vector<16x64xf32>
    %9 = arith.mulf %5, %8 : vector<16x64xf32>
    %10 = math.erf %9 : vector<16x64xf32>
    %cst_7 = arith.constant 1.000000e+00 : f32
    %11 = vector.broadcast %cst_7 : f32 to vector<16x64xf32>
    %12 = arith.addf %11, %10 : vector<16x64xf32>
    %13 = arith.mulf %7, %12 : vector<16x64xf32>
    %c0_8 = arith.constant 0 : index
    %c0_9 = arith.constant 0 : index
    %14 = vector.load %arg4[%c0_8, %c0_9] : memref<64x32xf32, #tpu.memory_space<vmem>>, vector<64x32xf32>
    %cst_10 = arith.constant dense<0.000000e+00> : vector<16x32xf32>
    %15 = tpu.matmul %13, %14, %cst_10 {dimension_numbers = #tpu.dot_dimension_numbers<[1], [0], [0], [1], [0, 0, 1, 1], [], []>} : vector<16x64xf32>, vector<64x32xf32>, vector<16x32xf32> -> vector<16x32xf32>
    %c0_11 = arith.constant 0 : index
    %c0_12 = arith.constant 0 : index
    %16 = vector.load %arg5[%c0_11, %c0_12] : memref<1x32xf32, #tpu.memory_space<vmem>>, vector<1x32xf32>
    %17 = vector.broadcast %16 : vector<1x32xf32> to vector<16x32xf32>
    %18 = arith.addf %15, %17 : vector<16x32xf32>
    %19 = arith.addf %18, %0 : vector<16x32xf32>
    %c0_13 = arith.constant 0 : index
    %c0_14 = arith.constant 0 : index
    %20 = vector.load %arg6[%c0_13, %c0_14] : memref<16x32xf32, #tpu.memory_space<vmem>>, vector<16x32xf32>
    tpu.vector_store %arg6[%c0_13, %c0_14], %19 {strides = array<i32>} : memref<16x32xf32, #tpu.memory_space<vmem>>, vector<16x32xf32>,
    return
  }
  func.func @transform_0(%arg0: i32) -> (i32, i32) {
    %c0_i32 = arith.constant 0 : i32
    %c0_i32_0 = arith.constant 0 : i32
    return %arg0, %c0_i32 : i32, i32
  }
  func.func @transform_1(%arg0: i32) -> (i32, i32) {
    %c0_i32 = arith.constant 0 : i32
    %c0_i32_0 = arith.constant 0 : i32
    %c0_i32_1 = arith.constant 0 : i32
    return %c0_i32, %c0_i32_0 : i32, i32
  }
  func.func @transform_2(%arg0: i32) -> (i32, i32) {
    %c0_i32 = arith.constant 0 : i32
    %c0_i32_0 = arith.constant 0 : i32
    %c0_i32_1 = arith.constant 0 : i32
    return %c0_i32, %c0_i32_0 : i32, i32
  }
  func.func @transform_3(%arg0: i32) -> (i32, i32) {
    %c0_i32 = arith.constant 0 : i32
    %c0_i32_0 = arith.constant 0 : i32
    %c0_i32_1 = arith.constant 0 : i32
    return %c0_i32, %c0_i32_0 : i32, i32
  }
  func.func @transform_4(%arg0: i32) -> (i32, i32) {
    %c0_i32 = arith.constant 0 : i32
    %c0_i32_0 = arith.constant 0 : i32
    %c0_i32_1 = arith.constant 0 : i32
    return %c0_i32, %c0_i32_0 : i32, i32
  }
  func.func @transform_5(%arg0: i32) -> (i32, i32) {
    %c0_i32 = arith.constant 0 : i32
    %c0_i32_0 = arith.constant 0 : i32
    return %arg0, %c0_i32 : i32, i32
  }
}

</mosaic_0001>

<bundles_post_ra>
// kernel: tpu_custom_call.1
= control target key start
LH: loop header
LB: loop body
LE: loop exit
PB: predicated region body
PF: predicated region fallthrough
CT: control target
= control target key end

     0   :  { %vm34_vm0 = vcmask 261120   ;;  %s416_s0 = inlined_call_operand.vmem [shape: f32[16,32], index: 0, kind: input, shape index: {}]   ;;  %s417_s1 = inlined_call_operand.vmem [shape: f32[32,64], index: 1, kind: input, shape index: {}]   ;;  %s418_s2 = inlined_call_operand.vmem [shape: f32[1,64], index: 2, kind: input, shape index: {}]   ;;  %s419_s3 = inlined_call_operand.vmem [shape: f32[64,32], index: 3, kind: input, shape index: {}]   ;;  %s420_s4 = inlined_call_operand.vmem [shape: f32[1,32], index: 4, kind: input, shape index: {}]   ;;  %s421_s5 = inlined_call_operand.hbm [shape: f32[16,32], index: 5, kind: output, shape index: {}]  }
   0x1   :  { %v26_v0 = vld [vmem:[%s417_s1 + $0x18] sm:$0xff]  ;;  %v25_v1 = vld [vmem:[%s417_s1 + $0x10] sm:$0xff]  ;;  %v366_v2 = vld [vmem:[%s416_s0] sm:$0xff] }
   0x2   :  { %265 = vmatprep.subr.mxu0 %v26_v0  ;;  %v24_v3 = vld [vmem:[%s417_s1 + $0x8] sm:$0xff]  ;;  %273 = vmatprep.mubr.msk.f32.mxu0 %vm34_vm0, %v366_v2 }
   0x3   :  { %266 = vmatpush3.msra.mxu0 %v26_v0 }
   0x4   :  { %10 = vsyncpa [#allocation3], 0  ;;  %267 = vmatprep.subr.mxu0 %v25_v1  ;;  %v23_v4 = vld [vmem:[%s417_s1] sm:$0xff]  ;;  %v22_v5 = vld [vmem:[%s416_s0 + $0x8] sm:$0xff]  ;;  %vm141_vm1 = vcmask 523264   ;;  %s324_s21 = smov [#allocation2]  }
   0x5   :  { %268 = vmatpush3.msra.mxu0 %v25_v1  ;;  %v133_v6 = vld [vmem:[%s419_s3 + $0x38] sm:$0xff]  ;;  %v132_v7 = vld [vmem:[%s419_s3 + $0x30] sm:$0xff]  ;;  %v131_v8 = vld [vmem:[%s419_s3 + $0x28] sm:$0xff]  ;;  %s232_s22 = sshll.u32 %s324_s21, 4  ;;  %s233_s22 = int_to_ptr.vmem [resolvable:$true] %s232_s22 }
   0x6   :  { %269 = vmatprep.subr.mxu0 %v24_v3  ;;  %276 = vmatprep.subr.mxu1 %v133_v6  ;;  %v130_v9 = vld [vmem:[%s419_s3 + $0x20] sm:$0xff]  ;;  %v129_v10 = vld [vmem:[%s419_s3 + $0x18] sm:$0xff]  ;;  %v128_v11 = vld [vmem:[%s419_s3 + $0x10] sm:$0xff]  ;;  %s302_s23 = scalar_lea.vmem %s233_s22, 256  ;;  %p307_p1 = scmp.lt.s32.totalorder %s233_s22, %s233_s22 }
   0x7   :  { %270 = vmatpush3.msra.mxu0 %v24_v3  ;;  %277 = vmatpush3.msra.mxu1 %v133_v6  ;;  %v127_v12 = vld [vmem:[%s419_s3 + $0x8] sm:$0xff]  ;;  %v126_v13 = vld [vmem:[%s419_s3] sm:$0xff]  ;;  %p303_p0 = scmp.ne.s32.totalorder %s233_s22, %s302_s23  ;;  %p308_p2 = scmp.lt.s32.totalorder %s302_s23, %s302_s23 }
   0x8   :  { %271 = vmatprep.subr.mxu0 %v23_v4  ;;  %278 = vmatprep.subr.mxu1 %v132_v7  ;;  %v243_v14 = vld [vmem:[%s418_s2] ss:$0 sm:$0xff] }
   0x9   :  { %272 = vmatpush3.msra.mxu0 %v23_v4  ;;  %279 = vmatpush3.msra.mxu1 %v132_v7  ;;  %v246_v29 = vld [vmem:[%s420_s4] ss:$0 sm:$0xff]  ;;  %p309_p3 = por %p308_p2, %p307_p1 }
   0xa   :  { %274 = vmatmul.mubr.msk.f32.vlgmr.msra.gmra.mxu0 %vm34_vm0, %v22_v5  ;;  %280 = vmatprep.subr.mxu1 %v131_v8 }
   0xb   :  { %281 = vmatpush3.msra.mxu1 %v131_v8  ;;  %p310_p4 = pnand %p309_p3, %p303_p0 }
   0xc   :  { %282 = vmatprep.subr.mxu1 %v130_v9 }
   0xd   :  { %283 = vmatpush3.msra.mxu1 %v130_v9 }
   0xe   :  { %284 = vmatprep.subr.mxu1 %v129_v10 }
   0xf   :  { %285 = vmatpush3.msra.mxu1 %v129_v10 }
  0x10   :  { %286 = vmatprep.subr.mxu1 %v128_v11 }
  0x11   :  { %287 = vmatpush3.msra.mxu1 %v128_v11 }
  0x12   :  { %288 = vmatprep.subr.mxu1 %v127_v12 }
  0x13   :  { %289 = vmatpush3.msra.mxu1 %v127_v12 }
  0x14   :  { %290 = vmatprep.subr.mxu1 %v126_v13 }
  0x15   :  { %291 = vmatpush3.msra.mxu1 %v126_v13 }
  0xca   :  { %v275_v15 = vpop.f32.mrf.mxu0 }
  0xcb   :  { %v113_v16 = vadd.f32 %v275_v15, %v243_v14 }
  0xcc   :  { %v107_v17 = vpop.f32.mrf.mxu0 }
  0xcd   :  { %v119_v18 = vmul.f32 0.70710677, %v113_v16  ;;  %v108_v19 = vadd.f32 %v243_v14, %v107_v17  ;;  %v117_v26 = vmul.f32 0.5, %v113_v16 }
  0xcf   :  { %298 = verf.f32 %v119_v18  ;;  %v118_v20 = vmul.f32 0.70710677, %v108_v19  ;;  %v116_v24 = vmul.f32 0.5, %v108_v19 }
  0xd1   :  { %300 = verf.f32 %v118_v20 }
  0xdc   :  { %v299_v21 = vpop.eup %298 }
  0xdd   :  { %v123_v23 = vadd.f32 1.0, %v299_v21 }
  0xde   :  { %v301_v22 = vpop.eup %300 }
  0xdf   :  { %v122_v25 = vadd.f32 1.0, %v301_v22  ;;  %v125_v28 = vmul.f32 %v123_v23, %v117_v26 }
  0xe1   :  { %v124_v27 = vmul.f32 %v122_v25, %v116_v24 }
  0xe3   :  { %292 = vmatprep.mubr.msk.f32.mxu1 %vm141_vm1, %v124_v27 }
  0xe4   :  { %293 = vmatmul.mubr.msk.f32.vlgmr.msra.gmra.mxu1 %vm141_vm1, %v125_v28 }
 0x1a4   :  { %v294_v30 = vpop.f32.mrf.mxu1 }
 0x1a5   :  { %v220_v31 = vadd.f32 %v294_v30, %v246_v29 }
 0x1a6   :  { %v214_v32 = vpop.f32.mrf.mxu1 }
 0x1a7   :  { %v224_v33 = vadd.f32 %v220_v31, %v22_v5  ;;  %v215_v34 = vadd.f32 %v246_v29, %v214_v32 }
 0x1a9   :  { %226 = vst.msk [vmem:[#allocation2 + $0x8] sm:$0xff] %vm34_vm0, %v224_v33  ;;  %v223_v35 = vadd.f32 %v215_v34, %v366_v2 }
 0x1ab   :  { %225 = vst.msk [vmem:[#allocation2] sm:$0xff] %vm34_vm0, %v223_v35 }
 0x1ac   :  { %313 = shalt.err (!%p310_p4)
}
 0x1ad   :  { %s325_s4 = smov 128   ;;  %s326_s24 = smov 8  }
 0x1ae   :  { %238 = dma.vmem_to_hbm [thread:$0]  %s233_s22, 256, %s421_s5, [#allocation3], %s325_s4, %s325_s4, %s326_s24  }
 0x1af   :  { %322 = dma.done.wait [#allocation3], 256  }
 0x1b0   :  { %323 = vsyncadd [#allocation3], 4294967040 }
 0x1b1   :  { %242 = vsyncpa [#allocation3], 1 }

</bundles_post_ra>
